<compile_context>
chip_gen: v7x
topology: tpu7x:2x2x1
jax: 0.10.0
libtpu: 0.0.40
codegen_flags: <defaults>
</compile_context>

<pallas_src>
import math

import jax
import jax.numpy as jnp
from jax.experimental import pallas as pl
from jax.experimental.pallas import tpu as pltpu

_VMEM_HEADROOM_BYTES = 4 * 1024 * 1024


def _independent_linear_kernel(x_ref, w_ref, b_ref, o_ref):
    # x_ref: (PT, B, D_in)     position-major activations
    # w_ref: (PT, D_in, D_out) pre-transposed weights (prepared once at init)
    # b_ref: (PT, 1, D_out)    biases (f32)
    # o_ref: (PT, B, D_out)
    x = x_ref[...].astype(w_ref.dtype)            # in-kernel cast; no extra HBM pass
    y = jnp.einsum("pbi,pio->pbo", x, w_ref[...],
                   preferred_element_type=jnp.float32)
    y = y + b_ref[...].astype(jnp.float32)        # (PT,1,D_out) broadcasts over B
    o_ref[...] = y.astype(o_ref.dtype)            # single dense whole-tile store


def _default_vmem_limit_bytes():
    """~3/4 of physical VMEM: ~96 MiB on v5e/v6e (128 MiB), ~48 MiB on v7x (64 MiB)."""
    cap = None
    try:
        info = pltpu.get_tpu_info()
        cap = getattr(info, "vmem_capacity_bytes", None)
    except Exception:
        cap = None
    if not cap:
        cap = 64 * 1024 * 1024  # conservative fallback: v7x per-TC VMEM
    return min(int(cap) * 3 // 4, 110 * 1024 * 1024)


def _choose_positions_per_step(P, B, D_in, D_out,
                               x_bytes, w_bytes, b_bytes, o_bytes,
                               vmem_budget_bytes):
    """Largest divisor-of-P position tile whose double-buffered working set fits the
    VMEM budget, preferring >= 2 grid steps (v7x megacore) whenever P >= 2."""

    def working_set(pt):
        return 2 * (pt * B * D_in * x_bytes          # x tile
                    + pt * D_in * D_out * w_bytes    # weight tile (dominant)
                    + pt * D_out * b_bytes           # bias tile
                    + pt * B * D_out * o_bytes)      # out tile

    divisors = [d for d in range(P, 0, -1) if P % d == 0]
    # Keep >= 2 grid steps when possible so both v7x TensorCores get work.
    candidates = [d for d in divisors if d < P] or divisors
    for pt in candidates:
        if working_set(pt) <= vmem_budget_bytes:
            return pt
    # Even a single position exceeds the budget: return the minimum legal tile
    # (compiler may spill, but never silently pick an over-budget whole-P tile).
    return 1


def prepare_params(weights, biases, *, weight_dtype=jnp.bfloat16):
    """One-time parameter prep (call at init, NOT per forward).

    weights: (P, D_out, D_in)  PyTorch nn.Linear layout, one layer per position.
    biases:  (P, D_out)
    Returns:
      w_prepared: (P, D_in, D_out) in `weight_dtype` (bf16 default: ~2x less HBM
                  weight traffic; f32 accumulation happens inside the kernel).
      b_prepared: (P, 1, D_out) float32.
    """
    P, D_out, D_in = weights.shape
    assert biases.shape == (P, D_out)
    w_prepared = jnp.swapaxes(weights, 1, 2).astype(weight_dtype)
    b_prepared = biases.astype(jnp.float32).reshape(P, 1, D_out)
    return w_prepared, b_prepared


def independent_linear(x, w_prepared, b_prepared, *,
                       vmem_limit_bytes=None, interpret=False):
    """
    x:          (B, P, D_in)      activations, PyTorch layout.
    w_prepared: (P, D_in, D_out)  from prepare_params().
    b_prepared: (P, 1, D_out)     from prepare_params().
    returns:    (B, P, D_out) in x.dtype.
    """
    B, P, D_in = x.shape
    Pw, D_in_w, D_out = w_prepared.shape
    assert Pw == P and D_in_w == D_in
    assert b_prepared.shape == (P, 1, D_out)
    out_dtype = x.dtype

    if vmem_limit_bytes is None:
        vmem_limit_bytes = _default_vmem_limit_bytes()

    # Position-major activations: every per-position access in the kernel is a
    # dense (B, D) slab. Only the small activation tensor is transposed per call;
    # the dominant weight tensor stays untouched.
    x_pm = jnp.swapaxes(x, 0, 1)                  # (P, B, D_in)

    pt = _choose_positions_per_step(
        P, B, D_in, D_out,
        x_pm.dtype.itemsize, w_prepared.dtype.itemsize,
        b_prepared.dtype.itemsize, jnp.dtype(out_dtype).itemsize,
        vmem_budget_bytes=max(vmem_limit_bytes - _VMEM_HEADROOM_BYTES, 1 << 20))
    assert P % pt == 0
    grid = (P // pt,)

    out_pm = pl.pallas_call(
        _independent_linear_kernel,
        out_shape=jax.ShapeDtypeStruct((P, B, D_out), out_dtype),
        grid=grid,
        in_specs=[
            pl.BlockSpec((pt, B, D_in), lambda t: (t, 0, 0)),      # activations
            pl.BlockSpec((pt, D_in, D_out), lambda t: (t, 0, 0)),  # weights
            pl.BlockSpec((pt, 1, D_out), lambda t: (t, 0, 0)),     # biases
        ],
        out_specs=pl.BlockSpec((pt, B, D_out), lambda t: (t, 0, 0)),
        compiler_params=pltpu.CompilerParams(
            dimension_semantics=("parallel",),
            vmem_limit_bytes=vmem_limit_bytes,
        ),
        interpret=interpret,
    )(x_pm, w_prepared, b_prepared)

    return jnp.swapaxes(out_pm, 0, 1)             # back to (B, P, D_out)


if __name__ == "__main__":
    # Small shapes consistent with the module's forward.
    batch = 2
    num_positions = 8
    input_dim = 32
    output_dim = 32

    key = jax.random.PRNGKey(0)
    kx, kw, kb = jax.random.split(key, 3)

    # Deterministic parameter init (nn.Linear-style uniform bounds).
    bound = 1.0 / math.sqrt(input_dim)
    x = jax.random.normal(kx, (batch, num_positions, input_dim), dtype=jnp.float32)
    weights = jax.random.uniform(
        kw, (num_positions, output_dim, input_dim),
        minval=-bound, maxval=bound, dtype=jnp.float32)
    biases = jax.random.uniform(
        kb, (num_positions, output_dim),
        minval=-bound, maxval=bound, dtype=jnp.float32)

    ref = jnp.einsum("bpi,poi->bpo", x, weights) + biases[None, :, :]

    # f32 weight path (tight reference check).
    w_f32, b_prep = prepare_params(weights, biases, weight_dtype=jnp.float32)
    out = jax.block_until_ready(independent_linear(x, w_f32, b_prep))
    assert out.shape == (batch, num_positions, output_dim)
    assert jnp.allclose(out, ref, atol=1e-5, rtol=1e-5)

    # Default bf16 weight/activation streaming path (f32 accumulation) — the main
    # dtype lever for this weight-DMA-bound kernel; looser tolerance expected.
    w_bf16, b_prep16 = prepare_params(weights, biases)
    out_bf16 = jax.block_until_ready(independent_linear(x, w_bf16, b_prep16))
    assert jnp.allclose(out_bf16.astype(jnp.float32), ref, atol=5e-2, rtol=5e-2)

    print("KERNEL_OK")
</pallas_src>

<mosaic_0001>
module attributes {stable_mosaic.version = 11 : i64} {
  func.func @_independent_linear_kernel(%arg0: i32, %arg1: memref<4x2x32xf32, #tpu.memory_space<vmem>>, %arg2: memref<4x32x32xf32, #tpu.memory_space<vmem>>, %arg3: memref<4x1x32xf32, #tpu.memory_space<vmem>>, %arg4: memref<4x2x32xf32, #tpu.memory_space<vmem>>) attributes {dimension_semantics = [#tpu.dimension_semantics<parallel>], iteration_bounds = array<i64: 2>, scalar_prefetch = 0 : i64, scratch_operands = 0 : i64, tpu.core_type = #tpu.core_type<tc>, window_params = [{transform_indices = @transform_0, window_bounds = array<i64: 4, 2, 32>}, {transform_indices = @transform_1, window_bounds = array<i64: 4, 32, 32>}, {transform_indices = @transform_2, window_bounds = array<i64: 4, 1, 32>}, {transform_indices = @transform_3, window_bounds = array<i64: 4, 2, 32>}]} {
    %c0 = arith.constant 0 : index
    %c0_0 = arith.constant 0 : index
    %c0_1 = arith.constant 0 : index
    %0 = vector.load %arg1[%c0, %c0_0, %c0_1] : memref<4x2x32xf32, #tpu.memory_space<vmem>>, vector<4x2x32xf32>
    %c0_2 = arith.constant 0 : index
    %c0_3 = arith.constant 0 : index
    %c0_4 = arith.constant 0 : index
    %1 = vector.load %arg2[%c0_2, %c0_3, %c0_4] : memref<4x32x32xf32, #tpu.memory_space<vmem>>, vector<4x32x32xf32>
    "tpu.trace_start"() <{level = 10 : i32, message = "pbi,pio->pbo"}> : () -> ()
    %cst = arith.constant dense<0.000000e+00> : vector<4x2x32xf32>
    %2 = tpu.matmul %0, %1, %cst {dimension_numbers = #tpu.dot_dimension_numbers<[2], [1], [1], [2], [0, 0, 0, 1, 1, 2], [0], [0]>} : vector<4x2x32xf32>, vector<4x32x32xf32>, vector<4x2x32xf32> -> vector<4x2x32xf32>
    "tpu.trace_stop"() : () -> ()
    %c0_5 = arith.constant 0 : index
    %c0_6 = arith.constant 0 : index
    %c0_7 = arith.constant 0 : index
    %3 = vector.load %arg3[%c0_5, %c0_6, %c0_7] : memref<4x1x32xf32, #tpu.memory_space<vmem>>, vector<4x1x32xf32>
    %4 = vector.broadcast %3 : vector<4x1x32xf32> to vector<4x2x32xf32>
    %5 = arith.addf %2, %4 : vector<4x2x32xf32>
    %c0_8 = arith.constant 0 : index
    %c0_9 = arith.constant 0 : index
    %c0_10 = arith.constant 0 : index
    %6 = vector.load %arg4[%c0_8, %c0_9, %c0_10] : memref<4x2x32xf32, #tpu.memory_space<vmem>>, vector<4x2x32xf32>
    tpu.vector_store %arg4[%c0_8, %c0_9, %c0_10], %5 {strides = array<i32>} : memref<4x2x32xf32, #tpu.memory_space<vmem>>, vector<4x2x32xf32>,
    return
  }
  func.func @transform_0(%arg0: i32) -> (i32, i32, i32) {
    %c0_i32 = arith.constant 0 : i32
    %c0_i32_0 = arith.constant 0 : i32
    %c0_i32_1 = arith.constant 0 : i32
    return %arg0, %c0_i32, %c0_i32_0 : i32, i32, i32
  }
  func.func @transform_1(%arg0: i32) -> (i32, i32, i32) {
    %c0_i32 = arith.constant 0 : i32
    %c0_i32_0 = arith.constant 0 : i32
    %c0_i32_1 = arith.constant 0 : i32
    return %arg0, %c0_i32, %c0_i32_0 : i32, i32, i32
  }
  func.func @transform_2(%arg0: i32) -> (i32, i32, i32) {
    %c0_i32 = arith.constant 0 : i32
    %c0_i32_0 = arith.constant 0 : i32
    %c0_i32_1 = arith.constant 0 : i32
    return %arg0, %c0_i32, %c0_i32_0 : i32, i32, i32
  }
  func.func @transform_3(%arg0: i32) -> (i32, i32, i32) {
    %c0_i32 = arith.constant 0 : i32
    %c0_i32_0 = arith.constant 0 : i32
    %c0_i32_1 = arith.constant 0 : i32
    return %arg0, %c0_i32, %c0_i32_0 : i32, i32, i32
  }
}

</mosaic_0001>

<bundles_post_ra>
// kernel: tpu_custom_call.1
= control target key start
LH: loop header
LB: loop body
LE: loop exit
PB: predicated region body
PF: predicated region fallthrough
CT: control target
= control target key end

     0   :  { %s1418_s0 = inlined_call_operand.hbm [shape: f32[8,2,32], index: 0, kind: input, shape index: {}]   ;;  %s1419_s1 = inlined_call_operand.hbm [shape: f32[8,32,32], index: 1, kind: input, shape index: {}]   ;;  %s1420_s2 = inlined_call_operand.hbm [shape: f32[8,1,32], index: 2, kind: input, shape index: {}]   ;;  %s1421_s3 = inlined_call_operand.hbm [shape: f32[8,2,32], index: 3, kind: output, shape index: {}]  }
   0x1   :  { %1424 = sst [smem:[#allocation12_spill]] %s1418_s0 }
   0x2   :  { %8 = vsyncpa [#allocation3], 0 }
   0x3   :  { %10 = vsyncpa [#allocation3 + $0x1], 0 }
   0x4   :  { %11 = vsyncpa [#allocation6], 0 }
   0x5   :  { %13 = vsyncpa [#allocation6 + $0x1], 0 }
   0x6   :  { %14 = vsyncpa [#allocation4], 0 }
   0x7   :  { %16 = vsyncpa [#allocation4 + $0x1], 0  ;;  %s1135_s12 = smov 0   ;;  %s1137_s13 = smov 0  }
   0x8   :  { %s1139_s14 = smov 0   ;;  %s1141_s15 = smov 0  }
   0x9 LB: > { %s1156_s16 = sadd.s32 4294967295, %s1098_s15   ;;  %s747_s17 = sadd.s32 4294967294, %s1098_s15   ;;  %s1098_s15 = sphi %s1141_s15, %s1441_s15   ;;  %s1094_s14 = sphi %s1139_s14, %s1440_s14   ;;  %s1090_s13 = sphi %s1137_s13, %s1439_s13   ;;  %s1086_s12 = sphi %s1135_s12, %s1438_s12  }
   0xa   : > { %s1160_s18 = sadd.s32 1, %s1098_s15   ;;  %s29_s19 = sadd.s32 1, %s1094_s14 }
   0xb   : > { %s26_s20 = ssub.s32 %s1098_s15, %s1160_s18  ;;  %p36_p0 = scmp.ne.s32.totalorder %s1094_s14, %s1090_s13 }
   0xc   : > { %p27_p1 = scmp.eq.s32.totalorder %s26_s20, 0  ;;  %p37_p2 = scmp.eq.s32.totalorder %s1098_s15, 0 }
   0xd   : > { %p42_p3 = scmp.ne.s32.totalorder %s1090_s13, %s1086_s12  ;;  %p43_p4 = scmp.eq.s32.totalorder %s1156_s16, 0 }
   0xe   : > { %s1172_s21 = scalar_select %p27_p1, %s1094_s14, %s29_s19  }
   0xf   : > { %p38_p5 = por %p37_p2, %p36_p0  ;;  %p1174_p6 = por %p43_p4, %p42_p3 }
  0x10   : > { %p118_p7 = scmp.eq.s32.totalorder %s1156_s16, 1  ;;  %p124_p8 = scmp.eq.s32.totalorder %s747_s17, 1 }
  0x11   : > { %s1425_s22 = scalar_select %p1174_p6, 1, 0 }
  0x12   : > { %p893_p10 = scmp.lt.s32.totalorder %s1098_s15, 2  ;;  %p1181_p11 = por %p118_p7, %p36_p0 }
  0x13   : > { %p1185_p12 = por %p124_p8, %p42_p3  ;;  %s1190_s25 = sand.u32 1, %s1094_s14  }
  0x14   : > { %s1426_s23 = scalar_select %p1181_p11, 1, 0 }
  0x15   : > { %s1427_s24 = scalar_select %p1185_p12, 1, 0 }
  0x16   : > { %p1192_p13 = pnand %p893_p10, %p38_p5  ;;  %s165_s27 = sand.u32 1, %s1098_s15  }
  0x17   : > { %s753_s28 = sshll.u32 %s1190_s25, 7  ;;  %s780_s29 = sshll.u32 %s1098_s15, 11 }
  0x18   : > { %s1202_s5 = scalar_lea.hbm %s1419_s1, %s780_s29  ;;  %s169_s6 = scalar_lea.vmem [#allocation5], %s753_s28 }
  0x19   : > { %s177_s7 = sshll.u32 %s169_s6, 4  ;;  %s1207_s8 = scalar_lea.sflag [#allocation6], %s165_s27  ;;  %s1204_s7 = int_to_ptr.vmem [resolvable:$true] %s177_s7 }
  0x1a   : > { %s938_s9 = scalar_lea.hbm %s1202_s5, 2048  ;;  %p1213_p2 = pneg %p1192_p13 }
  0x1b   : > { %p939_p1 = scmp.ne.s32.totalorder %s1202_s5, %s938_s9  ;;  %s943_s19 = scalar_lea.hbm %s1419_s1, 4096 }
  0x1c   : > { %p944_p5 = scmp.lt.u32.totalorder %s1202_s5, %s1419_s1  ;;  %p945_p7 = scmp.lt.u32.totalorder %s943_s19, %s938_s9 }
  0x1d   : > { %p941_p3 = pnand %p1213_p2, %p939_p1  ;;  %p947_p10 = scmp.lt.u32.totalorder %s938_s9, %s1202_s5 }
  0x1e   : > { %p946_p8 = por %p945_p7, %p944_p5 }
  0x1f   : > { %p942_p4 = pneg %p941_p3 }
  0x20   : > { %p948_p9 = por %p947_p10, %p946_p8 }
  0x22   : > { %p949_p0 = pnand %p948_p9, %p942_p4 }
  0x24   : > { %952 = shalt.err (!%p949_p0)
}
  0x25   : > { %s953_s27 = scalar_lea.vmem %s1204_s7, 2048  ;;  %s1100_s29 = smov [#allocation5]  }
  0x26   : > { %p954_p1 = scmp.ne.s32.totalorder %s1204_s7, %s953_s27  ;;  %s958_s30 = sshll.u32 %s1100_s29, 4  ;;  %s959_s30 = int_to_ptr.vmem [resolvable:$false] %s958_s30 }
  0x27   : > { %s960_s4 = scalar_lea.vmem %s959_s30, 4096  ;;  %p961_p11 = scmp.lt.s32.totalorder %s1204_s7, %s959_s30 }
  0x28   : > { %p956_p3 = pnand %p954_p1, %p1213_p2  ;;  %p962_p6 = scmp.lt.s32.totalorder %s960_s4, %s953_s27 }
  0x2a   : > { %p957_p12 = pneg %p956_p3  ;;  %p963_p5 = por %p962_p6, %p961_p11 }
  0x2c   : > { %p964_p7 = pnand %p963_p5, %p957_p12 }
  0x2e   : > { %967 = shalt.err (!%p964_p7)
}
  0x2f   : > { %s1101_s6 = smov 128   ;;  %s1102_s9 = smov 8  }
  0x30   : > { %885 = dma.hbm_to_vmem [thread:$0]  (!%p1192_p13), %s1202_s5, 2048, %s1204_s7, %s1207_s8, %s1101_s6, %s1101_s6, %s1102_s9  }
  0x31   : > { %p206_p9 = scmp.lt.s32.totalorder %s1098_s15, 3  ;;  %s750_s11 = sshll.u32 %s1190_s25, 3 }
  0x32   : > { %s778_s17 = sshll.u32 %s1098_s15, 7  ;;  %p1430_p6 = scmp.ge.s32.totalorder %s1098_s15, 1 }
  0x33   : > { %s1432_s0 = sld [smem:[#allocation12_spill]]  ;;  %s148_s29 = scalar_lea.vmem [#allocation2], %s750_s11 }
  0x34   : > { %p1242_p11 = pnand %p1430_p6, %p206_p9  ;;  %s155_s30 = sshll.u32 %s148_s29, 4  ;;  %s1251_s30 = int_to_ptr.vmem [resolvable:$true] %s155_s30 }
  0x35   : > { %s757_s5 = sshll.u32 %s1190_s25, 2  ;;  %s145_s7 = scalar_lea.sflag [#allocation3], %s1190_s25 }
  0x36   : > { %s1431_s19 = scalar_select %p1242_p11, 1, 0 }
  0x39   : > { %s1249_s27 = scalar_lea.hbm %s1432_s0, %s778_s17  ;;  %s973_s17 = scalar_lea.hbm %s1432_s0, 256 }
  0x3a   : > { %s968_s4 = scalar_lea.hbm %s1249_s27, 128  ;;  %p974_p8 = scmp.lt.u32.totalorder %s1249_s27, %s1432_s0 }
  0x3b   : > { %p969_p12 = scmp.ne.s32.totalorder %s1249_s27, %s968_s4  ;;  %p975_p10 = scmp.lt.u32.totalorder %s973_s17, %s968_s4 }
  0x3c   : > { %p977_p3 = scmp.lt.u32.totalorder %s968_s4, %s1249_s27 }
  0x3d   : > { %p971_p0 = pnand %p969_p12, %p1213_p2  ;;  %p976_p1 = por %p975_p10, %p974_p8 }
  0x3f   : > { %p972_p4 = pneg %p971_p0  ;;  %p978_p5 = por %p977_p3, %p976_p1 }
  0x41   : > { %p979_p7 = pnand %p978_p5, %p972_p4 }
  0x43   : > { %982 = shalt.err (!%p979_p7)
}
  0x44   : > { %s983_s11 = scalar_lea.vmem %s1251_s30, 128  ;;  %s1103_s29 = smov [#allocation2]  }
  0x45   : > { %p984_p9 = scmp.ne.s32.totalorder %s1251_s30, %s983_s11  ;;  %s988_s6 = sshll.u32 %s1103_s29, 4  ;;  %s989_s6 = int_to_ptr.vmem [resolvable:$false] %s988_s6 }
  0x46   : > { %s990_s9 = scalar_lea.vmem %s989_s6, 256  ;;  %p991_p0 = scmp.lt.s32.totalorder %s1251_s30, %s989_s6 }
  0x47   : > { %p986_p6 = pnand %p984_p9, %p1213_p2  ;;  %p992_p11 = scmp.lt.s32.totalorder %s990_s9, %s983_s11 }
  0x49   : > { %p987_p12 = pneg %p986_p6  ;;  %p993_p8 = por %p992_p11, %p991_p0 }
  0x4b   : > { %p994_p10 = pnand %p993_p8, %p987_p12 }
  0x4d   : > { %997 = shalt.err (!%p994_p10)
}
  0x4e   : > { %s1104_s4 = smov 32   ;;  %s1105_s17 = smov 2  }
  0x4f   : > { %882 = dma.hbm_to_vmem [thread:$0]  (!%p1192_p13), %s1249_s27, 128, %s1251_s30, %s145_s7, %s1104_s4, %s1104_s4, %s1105_s17  }
  0x50   : > { %s781_s20 = sshll.u32 %s1098_s15, 6  ;;  %s191_s6 = scalar_lea.vmem [#allocation7], %s757_s5 }
  0x51   : > { %s1282_s11 = scalar_lea.hbm %s1420_s2, %s781_s20  ;;  %s198_s9 = sshll.u32 %s191_s6, 4  ;;  %s1286_s9 = int_to_ptr.vmem [resolvable:$true] %s198_s9 }
  0x52   : > { %s998_s0 = scalar_lea.hbm %s1282_s11, 64  ;;  %s1003_s7 = scalar_lea.hbm %s1420_s2, 128 }
  0x53   : > { %p999_p11 = scmp.ne.s32.totalorder %s1282_s11, %s998_s0  ;;  %p1004_p3 = scmp.lt.u32.totalorder %s1282_s11, %s1420_s2 }
  0x54   : > { %p1005_p5 = scmp.lt.u32.totalorder %s1003_s7, %s998_s0  ;;  %p1007_p9 = scmp.lt.u32.totalorder %s998_s0, %s1282_s11 }
  0x55   : > { %p1001_p4 = pnand %p999_p11, %p1213_p2 }
  0x56   : > { %p1006_p7 = por %p1005_p5, %p1004_p3 }
  0x57   : > { %p1002_p1 = pneg %p1001_p4 }
  0x58   : > { %p1008_p6 = por %p1007_p9, %p1006_p7 }
  0x5a   : > { %p1009_p12 = pnand %p1008_p6, %p1002_p1 }
  0x5c   : > { %1012 = shalt.err (!%p1009_p12)
}
  0x5d   : > { %s1013_s25 = scalar_lea.vmem %s1286_s9, 64  ;;  %s1106_s5 = smov [#allocation7]  }
  0x5e   : > { %p1014_p0 = scmp.ne.s32.totalorder %s1286_s9, %s1013_s25  ;;  %s1018_s20 = sshll.u32 %s1106_s5, 4  ;;  %s1019_s20 = int_to_ptr.vmem [resolvable:$false] %s1018_s20 }
  0x5f   : > { %s1020_s28 = scalar_lea.vmem %s1019_s20, 128  ;;  %p1021_p11 = scmp.lt.s32.totalorder %s1286_s9, %s1019_s20 }
  0x60   : > { %p1016_p8 = pnand %p1014_p0, %p1213_p2  ;;  %p1022_p4 = scmp.lt.s32.totalorder %s1020_s28, %s1013_s25 }
  0x62   : > { %p1017_p10 = pneg %p1016_p8  ;;  %p1023_p3 = por %p1022_p4, %p1021_p11 }
  0x64   : > { %p1024_p5 = pnand %p1023_p3, %p1017_p10 }
  0x66   : > { %1027 = shalt.err (!%p1024_p5)
}
  0x67   : > { %s1107_s0 = smov 16   ;;  %s1108_s29 = smov 1  }
  0x68   : > { %888 = dma.hbm_to_vmem [thread:$0]  (!%p1192_p13), %s1282_s11, 64, %s1286_s9, %s1207_s8, %s1107_s0, %s1107_s0, %s1108_s29  }
  0x69   : > { %p1433_p2 = scmp.ne.s32.totalorder %s1431_s19, 0 }
  0x6a   : > { %s1313_s10 = sand.u32 (!%p1433_p2), 1, %s1090_s13   ;;  %p1434_p1 = scmp.ne.s32.totalorder (!%p1433_p2), %s1425_s22, 0 }
  0x6b   : > { %210 = sbr.rel (%p1433_p2) target bundleno = 366 (0x16e), region = 32  ;;  %s761_s6 = sshll.u32 (!%p1433_p2), %s1313_s10, 3 }
  0x6c   : > { %s213_s27 = scalar_lea.sflag (!%p1433_p2), [#allocation3], %s1313_s10  ;;  %s1319_s30 = scalar_lea.vmem (!%p1433_p2), [#allocation2], %s761_s6 }
  0x72   : > { %1073 = dma.done.wait (%p1434_p1), %s213_s27, 128  }
  0x73   : > { %1075 = vsyncadd (%p1434_p1), %s213_s27, 4294967168  ;;  %s221_s26 = sand.u32 1, %s1156_s16   ;;  %s762_s8 = sshll.u32 %s1313_s10, 7 }
  0x74   : > { %s222_s19 = scalar_lea.sflag [#allocation6], %s221_s26  ;;  %s1327_s11 = scalar_lea.vmem [#allocation5], %s762_s8 }
  0x75   : > { %1077 = dma.done.wait (%p1434_p1), %s222_s19, 2112  }
  0x76   : > { %1079 = vsyncadd (%p1434_p1), %s222_s19, 4294965184  ;;  %v1109_v0 = vmov 0.0|0.0   ;;  %vm1110_vm0 = vmmov 0   ;;  %v1111_v1 = vmov 0.0   ;;  %v275_v2 = vld [vmem:[%s1327_s11] sm:$0xff]  ;;  %v276_v3 = vld [vmem:[%s1327_s11 + $0x8] sm:$0xff] }
  0x77   : > { %847 = vmatprep.subr.bf16.mxu0 %v1109_v0  ;;  %853 = vmatprep.subr.bf16.mxu1 %v1109_v0  ;;  %v279_v4 = vld [vmem:[%s1327_s11 + $0x20] sm:$0xff]  ;;  %v848_v5 = vpack.c.bf16 %v276_v3, %v275_v2  ;;  %v280_v6 = vld [vmem:[%s1327_s11 + $0x28] sm:$0xff]  ;;  %v277_v7 = vld [vmem:[%s1327_s11 + $0x10] sm:$0xff]  ;;  %vm319_vm1 = vcmask 261120   ;;  %s763_s22 = sshll.u32 %s1313_s10, 2  ;;  %vm612_vm2 = vcmask 254976  }
  0x78   : > { %811 = vmatprep.mubr.msk.f32.mxu0 %vm1110_vm0, %v1111_v1  ;;  %822 = vmatprep.mubr.msk.f32.mxu1 %vm1110_vm0, %v1111_v1  ;;  %v278_v8 = vld [vmem:[%s1327_s11 + $0x18] sm:$0xff]  ;;  %v854_v9 = vpack.c.bf16 %v280_v6, %v279_v4  ;;  %v281_v10 = vld [vmem:[%s1327_s11 + $0x30] sm:$0xff]  ;;  %v283_v14 = vld [vmem:[%s1327_s11 + $0x40] sm:$0xff]  ;;  %s234_s9 = scalar_lea.vmem [#allocation7], %s763_s22  ;;  %s266_s7 = scalar_lea.vmem [#allocation8], %s761_s6 }
  0x79   : > { %v282_v11 = vld [vmem:[%s1327_s11 + $0x38] sm:$0xff]  ;;  %849 = vmatpush3.bf16.msra.mxu0 %v848_v5  ;;  %v851_v12 = vpack.c.bf16 %v278_v8, %v277_v7  ;;  %v284_v15 = vld [vmem:[%s1327_s11 + $0x48] sm:$0xff]  ;;  %v287_v16 = vld [vmem:[%s1327_s11 + $0x60] sm:$0xff]  ;;  %s631_s4 = sshll.u32 %s266_s7, 4  ;;  %s782_s17 = sshll.u32 %s1156_s16, 7  ;;  %s1367_s4 = int_to_ptr.vmem [resolvable:$true] %s631_s4 }
  0x7a   : > { %855 = vmatpush3.bf16.msra.mxu1 %v854_v9  ;;  %850 = vmatprep.subr.bf16.mxu0 %v1109_v0  ;;  %v857_v13 = vpack.c.bf16 %v282_v11, %v281_v10  ;;  %v288_v17 = vld [vmem:[%s1327_s11 + $0x68] sm:$0xff]  ;;  %v271_v18 = vld [vmem:[%s1319_s30] sm:$0x3]  ;;  %v860_v19 = vpack.c.bf16 %v284_v15, %v283_v14  ;;  %v272_v20 = vld [vmem:[%s1319_s30 + $0x2] sm:$0x3]  ;;  %s1372_s20 = scalar_lea.hbm %s1421_s3, %s782_s17  ;;  %s618_s16 = scalar_lea.sflag [#allocation4], %s1313_s10 }
  0x7b   : > { %856 = vmatprep.subr.bf16.mxu1 %v1109_v0  ;;  %v866_v21 = vpack.c.bf16 %v288_v17, %v287_v16  ;;  %v285_v22 = vld [vmem:[%s1327_s11 + $0x50] sm:$0xff]  ;;  %v286_v23 = vld [vmem:[%s1327_s11 + $0x58] sm:$0xff]  ;;  %v765_v30 = vld [vmem:[%s234_s9] ss:$0 sm:$0xff]  ;;  %s1028_s28 = scalar_lea.vmem %s1367_s4, 128  ;;  %p1435_p7 = scmp.ne.s32.totalorder %s1426_s23, 0 }
  0x7c   : > { %v289_v24 = vld [vmem:[%s1327_s11 + $0x70] sm:$0xff]  ;;  %v290_v25 = vld [vmem:[%s1327_s11 + $0x78] sm:$0xff]  ;;  %v863_v26 = vpack.c.bf16 %v286_v23, %v285_v22  ;;  %v766_v31 = vld [vmem:[%s234_s9 + $0x1] ss:$0 sm:$0xff]  ;;  %p1029_p13 = scmp.ne.s32.totalorder %s1367_s4, %s1028_s28  ;;  %s1112_s0 = smov [#allocation8]  }
  0x7d   : > { %852 = vmatpush3.bf16.msra.mxu0 %v851_v12  ;;  %v869_v27 = vpack.c.bf16 %v290_v25, %v289_v24  ;;  %v273_v28 = vld [vmem:[%s1319_s30 + $0x4] sm:$0x3]  ;;  %v274_v29 = vld [vmem:[%s1319_s30 + $0x6] sm:$0x3]  ;;  %v767_v38 = vld [vmem:[%s234_s9 + $0x2] ss:$0 sm:$0xff] }
  0x7e   : > { %858 = vmatpush3.bf16.msra.mxu1 %v857_v13  ;;  %859 = vmatprep.subr.bf16.mxu0 %v1109_v0  ;;  %v768_v39 = vld [vmem:[%s234_s9 + $0x3] ss:$0 sm:$0xff]  ;;  %p1030_p9 = pnand %p1029_p13, %p1435_p7  ;;  %s1032_s29 = sshll.u32 %s1112_s0, 4  ;;  %s1033_s29 = int_to_ptr.vmem [resolvable:$false] %s1032_s29 }
  0x7f   : > { %865 = vmatprep.subr.bf16.mxu1 %v1109_v0  ;;  %s1034_s6 = scalar_lea.vmem %s1033_s29, 256  ;;  %p1035_p12 = scmp.lt.s32.totalorder %s1367_s4, %s1033_s29 }
  0x80   : > { %812 = vmatmul.mubr.msk.f32.vlgmr.msra.gmra.mrb[0].mxu0 %vm319_vm1, %v271_v18  ;;  %p1031_p6 = pneg %p1030_p9  ;;  %p1036_p0 = scmp.lt.s32.totalorder %s1034_s6, %s1028_s28 }
  0x81   : > { %823 = vmatmul.mubr.msk.f32.vlgmr.msra.gmra.mrb[0].mxu1 %vm319_vm1, %v272_v20  ;;  %861 = vmatpush3.bf16.msra.mxu0 %v860_v19 }
  0x82   : > { %867 = vmatpush3.bf16.msra.mxu1 %v866_v21  ;;  %862 = vmatprep.subr.bf16.mxu0 %v1109_v0  ;;  %p1037_p8 = por %p1036_p0, %p1035_p12 }
  0x83   : > { %868 = vmatprep.subr.bf16.mxu1 %v1109_v0  ;;  %833 = vmatprep.mubr.msk.f32.mxu0 %vm1110_vm0, %v1111_v1 }
  0x84   : > { %844 = vmatprep.mubr.msk.f32.mxu1 %vm1110_vm0, %v1111_v1  ;;  %p1038_p10 = pnand %p1037_p8, %p1031_p6 }
  0x85   : > { %864 = vmatpush3.bf16.msra.mxu0 %v863_v26 }
  0x86   : > { %870 = vmatpush3.bf16.msra.mxu1 %v869_v27 }
  0x88   : > { %834 = vmatmul.mubr.msk.f32.vlgmr.msra.gmra.mrb[2].mxu0 %vm319_vm1, %v273_v28 }
  0x89   : > { %845 = vmatmul.mubr.msk.f32.vlgmr.msra.gmra.mrb[2].mxu1 %vm319_vm1, %v274_v29 }
 0x153   : > { %v389_v32 = vpop.f32.mrb[0].mxu0 }
 0x154   : > { %v390_v33 = vadd.f32 %v765_v30, %v389_v32  ;;  %v462_v34 = vpop.f32.mrb[0].mxu1  ;;  %v813_v35 = vpop.f32.mrb[1].mxu0 }
 0x155   : > { %v463_v36 = vadd.f32 %v766_v31, %v462_v34  ;;  %v824_v37 = vpop.f32.mrb[1].mxu1 }
 0x156   : > { %613 = vst.msk [vmem:[%s266_s7] sm:$0x3] %vm612_vm2, %v390_v33 }
 0x157   : > { %614 = vst.msk [vmem:[%s266_s7 + $0x2] sm:$0x3] %vm612_vm2, %v463_v36 }
 0x15b   : > { %v535_v40 = vpop.f32.mrb[2].mxu0 }
 0x15c   : > { %v536_v41 = vadd.f32 %v767_v38, %v535_v40  ;;  %v608_v42 = vpop.f32.mrb[2].mxu1  ;;  %v835_v43 = vpop.f32.mrb[3].mxu0 }
 0x15d   : > { %v609_v44 = vadd.f32 %v768_v39, %v608_v42  ;;  %v846_v45 = vpop.f32.mrb[3].mxu1 }
 0x15e   : > { %615 = vst.msk [vmem:[%s266_s7 + $0x4] sm:$0x3] %vm612_vm2, %v536_v41 }
 0x15f   : > { %616 = vst.msk [vmem:[%s266_s7 + $0x6] sm:$0x3] %vm612_vm2, %v609_v44 }
 0x160   : > { %1041 = shalt.err (!%p1038_p10)
}
 0x161   : > { %s1042_s27 = scalar_lea.hbm %s1372_s20, 128  ;;  %s1046_s8 = scalar_lea.hbm %s1421_s3, 256 }
 0x162   : > { %p1043_p11 = scmp.ne.s32.totalorder %s1372_s20, %s1042_s27  ;;  %p1047_p5 = scmp.lt.u32.totalorder %s1372_s20, %s1421_s3 }
 0x163   : > { %p1048_p2 = scmp.lt.u32.totalorder %s1046_s8, %s1042_s27  ;;  %p1050_p13 = scmp.lt.u32.totalorder %s1042_s27, %s1372_s20 }
 0x164   : > { %p1044_p4 = pnand %p1043_p11, %p1435_p7 }
 0x165   : > { %p1049_p1 = por %p1048_p2, %p1047_p5 }
 0x166   : > { %p1045_p3 = pneg %p1044_p4 }
 0x167   : > { %p1051_p9 = por %p1050_p13, %p1049_p1 }
 0x169   : > { %p1052_p6 = pnand %p1051_p9, %p1045_p3 }
 0x16b   : > { %1055 = shalt.err (!%p1052_p6)
}
 0x16c   : > { %s1113_s22 = smov 32   ;;  %s1114_s9 = smov 2  }
 0x16d   : > { %877 = dma.vmem_to_hbm [thread:$0]  (%p1435_p7), %s1367_s4, 128, %s1372_s20, %s618_s16, %s1113_s22, %s1113_s22, %s1114_s9  }
 0x16e PF: > { %s646_s7 = sand.u32 1, %s1086_s12   ;;  %p1436_p12 = scmp.ne.s32.totalorder %s1427_s24, 0 }
 0x16f   : > { %p1437_p0 = scmp.ge.s32.totalorder %s1098_s15, 2  ;;  %s647_s17 = scalar_lea.sflag [#allocation4], %s646_s7 }
 0x171   : > { %p890_p8 = pnand %p1437_p0, %p1436_p12 }
 0x173   : > { %1081 = dma.done.wait (!%p890_p8), %s647_s17, 128  }
 0x174   : > { %1083 = vsyncadd (!%p890_p8), %s647_s17, 4294967168  ;;  %p19_p10 = scmp.ge.s32.totalorder %s1160_s18, 4   ;;  %s1438_s12 = smov %s1090_s13 }
 0x175   : > { %s1439_s13 = smov %s1094_s14  ;;  %s1440_s14 = smov %s1172_s21 }
 0x176   : > { %s1441_s15 = smov %s1160_s18  ;;  %21 = sbr.rel (!%p19_p10) target bundleno = 9 (0x9), region = 101 }
 0x17d   :  { %652 = vsyncpa [#allocation3], 1 }
 0x17e   :  { %654 = vsyncpa [#allocation3 + $0x1], 1 }
 0x17f   :  { %655 = vsyncpa [#allocation6], 1 }
 0x180   :  { %657 = vsyncpa [#allocation6 + $0x1], 1 }
 0x181   :  { %658 = vsyncpa [#allocation4], 1 }
 0x182   :  { %660 = vsyncpa [#allocation4 + $0x1], 1 }

</bundles_post_ra>
